<compile_context>
chip_gen: v6e
topology: v6e:2x2x1
jax: 0.10.0
libtpu: 0.0.40
codegen_flags: <defaults>
</compile_context>

<pallas_src>
import functools

import jax
import jax.numpy as jnp
from jax.experimental import pallas as pl
from jax.experimental.pallas import tpu as pltpu


def _quanv_kernel(x_ref, o_ref, *, k, W, hwp):
    """Fused unfold + per-patch circuit for one block of images.

    x_ref: (tbc, hwp)      flattened images, lane-dense (hwp % 128 == 0).
    o_ref: (P, tbc, hwp)   cumulative wire products; P outermost -> dense stores.
    """
    c = jnp.cos(x_ref[...])                  # EUP transcendental, once per block
    acc = None
    p = 0
    for di in range(k):                      # static unroll, P = k*k is small
        for dj in range(k):
            s = di * W + dj                  # flat offset of wire (di, dj)
            # Bring x[q + s] to flat position q via an XLU lane rotation; the
            # wrap-around only contaminates positions outside the valid
            # (out_h, out_w) window, which the wrapper slices off.
            w = c if s == 0 else pltpu.roll(c, shift=hwp - s, axis=1)
            acc = w if acc is None else acc * w
            o_ref[p] = acc                   # full (tbc, hwp) slab: unmasked store
            p += 1


def _round_up(a, b):
    return -(-a // b) * b


def quanv_layer_forward(x, qkernel_shape, *, min_grid_steps=4):
    """Pallas TPU port of QuanvLayer.forward.

    x: (B, C, H, W) float32 (NCHW, stride-1 / pad-0 unfold as in the module).
    returns: (B, C * qkernel_shape**2, out_h, out_w) float32 with the same
    flat-buffer semantics as torch's `outputs.view(B, -1, out_h, out_w)`.
    """
    k = qkernel_shape
    P = k * k
    B, C, H, W = x.shape
    out_h = H - k + 1
    out_w = W - k + 1
    BC = B * C
    HW = H * W
    HWp = _round_up(HW, 128)                 # lane-dense flattened image length

    # Generation-aware VMEM budget (v7x: 64 MiB per TC; v5e/v6e: 128 MiB).
    try:
        vmem_phys = getattr(pltpu.get_tpu_info(), "vmem_capacity_bytes", 64 << 20)
    except Exception:
        vmem_phys = 64 << 20
    vmem_limit = int(min(vmem_phys // 2, 64 << 20))   # ~32 MiB on v7x, 64 MiB on v5e/v6e
    budget = (3 * vmem_limit) // 4                    # headroom (regalloc, sublane pad)

    # Per-image VMEM for one grid step: double-buffered input block, double-
    # buffered output block, plus in-kernel temporaries (cos, acc, rolled window).
    per_img = (2 * 1 + 2 * P + 4) * HWp * 4
    cap = max(1, budget // per_img)
    # TODO(synk): images with per_img > budget would need an extra row-band grid
    # axis with overlapping input windows; not required at these shapes.

    tbc = max(1, min(cap, BC))
    # Keep >= min_grid_steps grid steps when BC allows, so dual-TensorCore chips
    # (v7x) shard the "parallel" axis with multiple steps per core; the cost on
    # single-TC v5e/v6e is only a few ~0.35us per-step overheads.
    if BC >= min_grid_steps:
        tbc = min(tbc, -(-BC // min_grid_steps))
    grid_len = -(-BC // tbc)
    tbc = -(-BC // grid_len)                 # rebalance block size across steps
    bc_pad = tbc * grid_len                  # pad with zero images (never tbc=1 fallback)

    x2 = x.reshape(BC, HW).astype(jnp.float32)
    if bc_pad != BC or HWp != HW:
        x2 = jnp.pad(x2, ((0, bc_pad - BC), (0, HWp - HW)))  # cos(0)=1, sliced off later
    x3 = x2.reshape(grid_len, tbc, HWp)      # free reshape; one block per grid step

    out = pl.pallas_call(
        functools.partial(_quanv_kernel, k=k, W=W, hwp=HWp),
        out_shape=jax.ShapeDtypeStruct((grid_len, P, tbc, HWp), jnp.float32),
        grid=(grid_len,),
        in_specs=[pl.BlockSpec((None, tbc, HWp), lambda i: (i, 0, 0))],
        out_specs=pl.BlockSpec((None, P, tbc, HWp), lambda i: (i, 0, 0, 0)),
        compiler_params=pltpu.CompilerParams(
            dimension_semantics=("parallel",),
            vmem_limit_bytes=vmem_limit,
        ),
    )(x3)

    # Reproduce torch's `.view(B, -1, oh, ow)` of the stacked (N, P) measurements,
    # i.e. flat memory order (b, c, i, j, p).  P must be minor in the final
    # buffer (lane-hostile for a direct kernel store), so this single fused
    # slice + transpose is the one remaining wrapper-side copy.
    out = out.transpose(0, 2, 3, 1)                      # (grid, tbc, HWp, P)
    out = out.reshape(bc_pad, HWp, P)[:BC, :HW]          # drop bc / flat padding
    out = out.reshape(B, C, H, W, P)[:, :, :out_h, :out_w]
    return out.reshape(B, C * P, out_h, out_w)


def _reference(x, k):
    """Pure-JAX reference of the same semantics (for correctness check)."""
    P = k * k
    B, C, H, W = x.shape
    out_h, out_w = H - k + 1, W - k + 1
    patches = jnp.stack(
        [x[:, :, di:di + out_h, dj:dj + out_w] for di in range(k) for dj in range(k)],
        axis=-1,
    ).reshape(-1, P)
    meas = jnp.cumprod(jnp.cos(patches), axis=1)  # (N, P)
    return meas.reshape(B, -1, out_h, out_w)


if __name__ == "__main__":
    key = jax.random.PRNGKey(0)
    B, C, H, W = 2, 4, 16, 16
    qkernel_shape = 2

    x = jax.random.uniform(key, (B, C, H, W), dtype=jnp.float32)

    out = quanv_layer_forward(x, qkernel_shape)
    out = jax.block_until_ready(out)

    ref = _reference(x, qkernel_shape)
    assert out.shape == (B, C * qkernel_shape ** 2, H - qkernel_shape + 1,
                         W - qkernel_shape + 1), out.shape
    assert out.dtype == jnp.float32
    assert jnp.allclose(out, ref, atol=1e-5, rtol=1e-5)

    print("KERNEL_OK")
</pallas_src>

<mosaic_0001>
module attributes {stable_mosaic.version = 11 : i64} {
  func.func @_quanv_kernel(%arg0: i32, %arg1: memref<1x2x256xf32, #tpu.memory_space<vmem>>, %arg2: memref<1x4x2x256xf32, #tpu.memory_space<vmem>>) attributes {dimension_semantics = [#tpu.dimension_semantics<parallel>], iteration_bounds = array<i64: 4>, scalar_prefetch = 0 : i64, scratch_operands = 0 : i64, tpu.core_type = #tpu.core_type<tc>, window_params = [{transform_indices = @transform_0, window_bounds = array<i64: 1, 2, 256>}, {transform_indices = @transform_1, window_bounds = array<i64: 1, 4, 2, 256>}]} {
    %c0 = arith.constant 0 : index
    %c0_0 = arith.constant 0 : index
    %c0_1 = arith.constant 0 : index
    %0 = vector.load %arg1[%c0, %c0_0, %c0_1] : memref<1x2x256xf32, #tpu.memory_space<vmem>>, vector<1x2x256xf32>
    %1 = vector.shape_cast %0 : vector<1x2x256xf32> to vector<2x256xf32>
    %2 = math.cos %1 : vector<2x256xf32>
    %c0_2 = arith.constant 0 : index
    %c0_3 = arith.constant 0 : index
    %c0_4 = arith.constant 0 : index
    %c0_5 = arith.constant 0 : index
    %3 = vector.load %arg2[%c0_2, %c0_3, %c0_4, %c0_5] : memref<1x4x2x256xf32, #tpu.memory_space<vmem>>, vector<1x1x2x256xf32>
    %4 = vector.shape_cast %3 : vector<1x1x2x256xf32> to vector<2x256xf32>
    %5 = vector.shape_cast %2 : vector<2x256xf32> to vector<1x1x2x256xf32>
    tpu.vector_store %arg2[%c0_2, %c0_3, %c0_4, %c0_5], %5 {strides = array<i32>} : memref<1x4x2x256xf32, #tpu.memory_space<vmem>>, vector<1x1x2x256xf32>,
    %c255_i32 = arith.constant 255 : i32
    %6 = tpu.dynamic_rotate %2 by %c255_i32 dim 1 : vector<2x256xf32>, i32 -> vector<2x256xf32>
    %7 = arith.mulf %2, %6 : vector<2x256xf32>
    %c0_6 = arith.constant 0 : index
    %c1 = arith.constant 1 : index
    %c0_7 = arith.constant 0 : index
    %c0_8 = arith.constant 0 : index
    %8 = vector.load %arg2[%c0_6, %c1, %c0_7, %c0_8] : memref<1x4x2x256xf32, #tpu.memory_space<vmem>>, vector<1x1x2x256xf32>
    %9 = vector.shape_cast %8 : vector<1x1x2x256xf32> to vector<2x256xf32>
    %10 = vector.shape_cast %7 : vector<2x256xf32> to vector<1x1x2x256xf32>
    tpu.vector_store %arg2[%c0_6, %c1, %c0_7, %c0_8], %10 {strides = array<i32>} : memref<1x4x2x256xf32, #tpu.memory_space<vmem>>, vector<1x1x2x256xf32>,
    %c240_i32 = arith.constant 240 : i32
    %11 = tpu.dynamic_rotate %2 by %c240_i32 dim 1 : vector<2x256xf32>, i32 -> vector<2x256xf32>
    %12 = arith.mulf %7, %11 : vector<2x256xf32>
    %c0_9 = arith.constant 0 : index
    %c2 = arith.constant 2 : index
    %c0_10 = arith.constant 0 : index
    %c0_11 = arith.constant 0 : index
    %13 = vector.load %arg2[%c0_9, %c2, %c0_10, %c0_11] : memref<1x4x2x256xf32, #tpu.memory_space<vmem>>, vector<1x1x2x256xf32>
    %14 = vector.shape_cast %13 : vector<1x1x2x256xf32> to vector<2x256xf32>
    %15 = vector.shape_cast %12 : vector<2x256xf32> to vector<1x1x2x256xf32>
    tpu.vector_store %arg2[%c0_9, %c2, %c0_10, %c0_11], %15 {strides = array<i32>} : memref<1x4x2x256xf32, #tpu.memory_space<vmem>>, vector<1x1x2x256xf32>,
    %c239_i32 = arith.constant 239 : i32
    %16 = tpu.dynamic_rotate %2 by %c239_i32 dim 1 : vector<2x256xf32>, i32 -> vector<2x256xf32>
    %17 = arith.mulf %12, %16 : vector<2x256xf32>
    %c0_12 = arith.constant 0 : index
    %c3 = arith.constant 3 : index
    %c0_13 = arith.constant 0 : index
    %c0_14 = arith.constant 0 : index
    %18 = vector.load %arg2[%c0_12, %c3, %c0_13, %c0_14] : memref<1x4x2x256xf32, #tpu.memory_space<vmem>>, vector<1x1x2x256xf32>
    %19 = vector.shape_cast %18 : vector<1x1x2x256xf32> to vector<2x256xf32>
    %20 = vector.shape_cast %17 : vector<2x256xf32> to vector<1x1x2x256xf32>
    tpu.vector_store %arg2[%c0_12, %c3, %c0_13, %c0_14], %20 {strides = array<i32>} : memref<1x4x2x256xf32, #tpu.memory_space<vmem>>, vector<1x1x2x256xf32>,
    return
  }
  func.func @transform_0(%arg0: i32) -> (i32, i32, i32) {
    %c0_i32 = arith.constant 0 : i32
    %c0_i32_0 = arith.constant 0 : i32
    %c0_i32_1 = arith.constant 0 : i32
    return %arg0, %c0_i32, %c0_i32_0 : i32, i32, i32
  }
  func.func @transform_1(%arg0: i32) -> (i32, i32, i32, i32) {
    %c0_i32 = arith.constant 0 : i32
    %c0_i32_0 = arith.constant 0 : i32
    %c0_i32_1 = arith.constant 0 : i32
    %c0_i32_2 = arith.constant 0 : i32
    return %arg0, %c0_i32, %c0_i32_0, %c0_i32_1 : i32, i32, i32, i32
  }
}

</mosaic_0001>

<bundles_post_ra>
// kernel: tpu_custom_call.1
= control target key start
LH: loop header
LB: loop body
LE: loop exit
PB: predicated region body
PF: predicated region fallthrough
CT: control target
= control target key end

     0   :  { %6 = vsyncpa [#allocation3], 0  ;;  %s790_s0 = inlined_call_operand.hbm [shape: f32[4,2,256], index: 0, kind: input, shape index: {}]   ;;  %s791_s1 = inlined_call_operand.hbm [shape: f32[4,4,2,256], index: 1, kind: output, shape index: {}]  }
   0x1   :  { %8 = vsyncpa [#allocation3 + $0x1], 0 }
   0x2   :  { %9 = vsyncpa [#allocation4], 0 }
   0x3   :  { %11 = vsyncpa [#allocation4 + $0x1], 0  ;;  %s608_s6 = smov 0   ;;  %s610_s7 = smov 0  }
   0x4   :  { %s612_s8 = smov 0   ;;  %s614_s9 = smov 0  }
   0x5 LB: > { %s629_s10 = sadd.s32 4294967295, %s582_s9   ;;  %s401_s11 = sadd.s32 4294967294, %s582_s9   ;;  %s582_s9 = sphi %s614_s9, %s807_s9   ;;  %s578_s8 = sphi %s612_s8, %s806_s8   ;;  %s574_s7 = sphi %s610_s7, %s805_s7   ;;  %s570_s6 = sphi %s608_s6, %s804_s6  }
   0x6   : > { %s633_s12 = sadd.s32 1, %s582_s9   ;;  %s24_s13 = sadd.s32 1, %s578_s8 }
   0x7   : > { %s21_s14 = ssub.s32 %s582_s9, %s633_s12  ;;  %p31_p0 = scmp.ne.s32.totalorder %s578_s8, %s574_s7 }
   0x8   : > { %p22_p1 = scmp.eq.s32.totalorder %s21_s14, 0  ;;  %p32_p2 = scmp.eq.s32.totalorder %s582_s9, 0 }
   0x9   : > { %p37_p3 = scmp.ne.s32.totalorder %s574_s7, %s570_s6  ;;  %p38_p4 = scmp.eq.s32.totalorder %s629_s10, 0 }
   0xa   : > { %s645_s15 = scalar_select %p22_p1, %s578_s8, %s24_s13  }
   0xb   : > { %p647_p5 = por %p32_p2, %p31_p0  ;;  %p651_p6 = por %p38_p4, %p37_p3 }
   0xc   : > { %p61_p7 = scmp.eq.s32.totalorder %s629_s10, 3  ;;  %p67_p8 = scmp.eq.s32.totalorder %s401_s11, 3 }
   0xd   : > { %s795_s17 = scalar_select %p651_p6, 1, 0 }
   0xe   : > { %p440_p9 = scmp.lt.s32.totalorder %s582_s9, 4  ;;  %p657_p10 = por %p61_p7, %p31_p0 }
   0xf   : > { %p661_p11 = por %p67_p8, %p37_p3  ;;  %s87_s20 = sand.u32 1, %s578_s8  }
  0x10   : > { %s796_s18 = scalar_select %p657_p10, 1, 0 }
  0x11   : > { %s797_s19 = scalar_select %p661_p11, 1, 0 }
  0x12   : > { %s422_s21 = sshll.u32 %s582_s9, 6  ;;  %s404_s22 = sshll.u32 %s87_s20, 2 }
  0x13   : > { %s670_s25 = scalar_lea.hbm %s790_s0, %s422_s21  ;;  %s91_s26 = scalar_lea.vmem [#allocation2], %s404_s22 }
  0x14   : > { %s99_s27 = sshll.u32 %s91_s26, 4  ;;  %p674_p12 = pnand %p440_p9, %p647_p5  ;;  %s678_s27 = int_to_ptr.vmem [resolvable:$true] %s99_s27 }
  0x15   : > { %s88_s29 = scalar_lea.sflag [#allocation3], %s87_s20  ;;  %s490_s30 = scalar_lea.hbm %s670_s25, 64 }
  0x16   : > { %p491_p1 = scmp.ne.s32.totalorder %s670_s25, %s490_s30  ;;  %p492_p2 = pneg %p674_p12 }
  0x17   : > { %s495_s4 = scalar_lea.hbm %s790_s0, 256  ;;  %p496_p5 = scmp.lt.s32.totalorder %s670_s25, %s790_s0 }
  0x18   : > { %p493_p3 = pnand %p492_p2, %p491_p1  ;;  %p497_p7 = scmp.lt.s32.totalorder %s495_s4, %s490_s30 }
  0x1a   : > { %p494_p4 = pneg %p493_p3  ;;  %p498_p8 = por %p497_p7, %p496_p5 }
  0x1c   : > { %p499_p9 = pnand %p498_p8, %p494_p4 }
  0x1e   : > { %502 = shalt.err (!%p499_p9)
}
  0x1f   : > { %s503_s13 = scalar_lea.vmem %s678_s27, 64  ;;  %s584_s14 = smov [#allocation2]  }
  0x20   : > { %p504_p13 = scmp.ne.s32.totalorder %s678_s27, %s503_s13  ;;  %s508_s16 = sshll.u32 %s584_s14, 4  ;;  %s509_s16 = int_to_ptr.vmem [resolvable:$false] %s508_s16 }
  0x21   : > { %s510_s20 = scalar_lea.vmem %s509_s16, 128  ;;  %p511_p3 = scmp.lt.s32.totalorder %s678_s27, %s509_s16 }
  0x22   : > { %p506_p0 = pnand %p504_p13, %p492_p2  ;;  %p512_p11 = scmp.lt.s32.totalorder %s510_s20, %s503_s13 }
  0x24   : > { %p507_p1 = pneg %p506_p0  ;;  %p513_p10 = por %p512_p11, %p511_p3 }
  0x26   : > { %p514_p6 = pnand %p513_p10, %p507_p1 }
  0x28   : > { %517 = shalt.err (!%p514_p6)
}
  0x29   : > { %435 = dma.hbm_to_vmem [thread:$0]  (!%p674_p12), %s670_s25, 64, %s678_s27, %s88_s29  }
  0x2a   : > { %p799_p4 = scmp.lt.s32.totalorder %s582_s9, 5  ;;  %p800_p5 = scmp.ge.s32.totalorder %s582_s9, 1 }
  0x2c   : > { %p105_p13 = pnand %p800_p5, %p799_p4 }
  0x2d   : > { %s705_s21 = sand.u32 (!%p105_p13), 1, %s574_s7   ;;  %p801_p6 = scmp.ne.s32.totalorder (!%p105_p13), %s795_s17, 0 }
  0x2e   : > { %108 = sbr.rel (%p105_p13) target bundleno = 282 (0x11a), region = 24  ;;  %s408_s22 = sshll.u32 (!%p105_p13), %s705_s21, 2 }
  0x2f   : > { %s111_s23 = scalar_lea.sflag (!%p105_p13), [#allocation3], %s705_s21  ;;  %s114_s24 = scalar_lea.vmem (!%p105_p13), [#allocation2], %s408_s22 }
  0x33   : > { %561 = dma.done.wait (%p801_p6), %s111_s23, 64  }
  0x34   : > { %563 = vsyncadd (%p801_p6), %s111_s23, 4294967232  ;;  %v713_v0 = vld [vmem:[%s114_s24] sm:$0xf]  ;;  %v585_v12 = vmov 683565275   ;;  %s409_s17 = sshll.u32 %s705_s21, 4 }
  0x35   : > { %v137_v1 = vand.u32 2139095040, %v713_v0  ;;  %v134_v3 = vand.u32 2147483647, %v713_v0  ;;  %v586_v14 = vmov 2475754826   ;;  %vm136_vm7 = vcmp.lt.s32.totalorder %v713_v0, 0 }
  0x36   : > { %v587_v16 = vmov 2131351028   ;;  %v588_v18 = vmov 2102212464   ;;  %v589_v20 = vmov 920167782   ;;  %vm226_vm12 = vweird.f32 %v713_v0 }
  0x37   : > { %v138_v2 = vshrl.u32 %v137_v1, 23  ;;  %v141_v6 = vand.u32 8388607, %v134_v3  ;;  %v590_v27 = vmov 1326507024   ;;  %s735_s25 = scalar_lea.vmem [#allocation5], %s409_s17 }
  0x38   : > { %vm135_vm8 = vcmp.le.f32.partialorder %v134_v3, 0.7853982  ;;  %s592_s26 = smov 112   ;;  %s593_s27 = smov 127  }
  0x39   : > { %v410_v4 = vadd.s32 4294967169, %v138_v2  ;;  %v142_v9 = vor.u32 8388608, %v141_v6  ;;  %s594_s28 = smov 111   ;;  %s328_s29 = sshll.u32 %s735_s25, 4  ;;  %s740_s29 = int_to_ptr.vmem [resolvable:$true] %s328_s29 }
  0x3a   : > { %s423_s30 = sshll.u32 %s629_s10, 8  ;;  %s315_s5 = scalar_lea.sflag [#allocation4], %s705_s21 }
  0x3b   : > { %v144_v5 = vadd.s32 1, %v410_v4  ;;  %v182_v29 = vshll.u32 %v142_v9, 8  ;;  %s746_s4 = scalar_lea.hbm %s791_s1, %s423_s30  ;;  %s518_s11 = scalar_lea.vmem %s740_s29, 256 }
  0x3c   : > { %p519_p10 = scmp.ne.s32.totalorder %s740_s29, %s518_s11  ;;  %p802_p11 = scmp.ne.s32.totalorder %s796_s18, 0 }
  0x3d   : > { %vm145_vm0 = vcmp.gt.s32.totalorder %v144_v5, 0  ;;  %s595_s10 = smov [#allocation5]  }
  0x3e   : > { %v146_v7 = vsel %vm145_vm0, %v144_v5, 0  ;;  %p520_p12 = pnand %p519_p10, %p802_p11  ;;  %s522_s13 = sshll.u32 %s595_s10, 4  ;;  %s523_s13 = int_to_ptr.vmem [resolvable:$false] %s522_s13 }
  0x3f   : > { %v148_v8 = vand.u32 31, %v146_v7  ;;  %v147_v10 = vshrl.u32 %v146_v7, 5  ;;  %s524_s14 = scalar_lea.vmem %s523_s13, 512  ;;  %p525_p2 = scmp.lt.s32.totalorder %s740_s29, %s523_s13 }
  0x40   : > { %p521_p0 = pneg %p520_p12  ;;  %p526_p7 = scmp.lt.s32.totalorder %s524_s14, %s518_s11 }
  0x41   : > { %v149_v11 = vsub.s32 32, %v148_v8  ;;  %v151_v13 = vshll.u32 %v585_v12, %v148_v8  ;;  %v154_v15 = vshll.u32 %v586_v14, %v148_v8  ;;  %v157_v17 = vshll.u32 %v587_v16, %v148_v8 }
  0x42   : > { %v160_v19 = vshll.u32 %v588_v18, %v148_v8  ;;  %v163_v21 = vshll.u32 %v589_v20, %v148_v8  ;;  %vm166_vm1 = vcmp.lt.s32.totalorder %v147_v10, 1  ;;  %vm169_vm2 = vcmp.lt.s32.totalorder %v147_v10, 4  ;;  %p527_p8 = por %p526_p7, %p525_p2 }
  0x43   : > { %v150_v22 = vshrl.u32 %v585_v12, %v149_v11  ;;  %v152_v23 = vshrl.u32 %v586_v14, %v149_v11  ;;  %v155_v24 = vshrl.u32 %v587_v16, %v149_v11  ;;  %v158_v25 = vshrl.u32 %v588_v18, %v149_v11 }
  0x44   : > { %v161_v26 = vshrl.u32 %v589_v20, %v149_v11  ;;  %v164_v28 = vshrl.u32 %v590_v27, %v149_v11  ;;  %vm167_vm3 = vcmp.lt.s32.totalorder %v147_v10, 2  ;;  %vm168_vm4 = vcmp.lt.s32.totalorder %v147_v10, 3  ;;  %p528_p9 = pnand %p527_p8, %p521_p0 }
  0x45   : > { %v153_v30 = vor.u32 %v152_v23, %v151_v13  ;;  %v156_v31 = vor.u32 %v155_v24, %v154_v15  ;;  %v159_v32 = vor.u32 %v158_v25, %v157_v17  ;;  %v591_v20 = vmov 1983009808  }
  0x46   : > { %v162_v33 = vor.u32 %v161_v26, %v160_v19  ;;  %v165_v34 = vor.u32 %v164_v28, %v163_v21  ;;  %v240_v21 = vunpack.c.l.s4 %v591_v20 }
  0x47   : > { %v170_v35 = vsel %vm166_vm1, %v150_v22, %v153_v30  ;;  %v171_v36 = vsel %vm169_vm2, %v159_v32, 2102212464  ;;  %v174_v37 = vsel %vm166_vm1, %v153_v30, %v156_v31  ;;  %v178_v38 = vsel %vm166_vm1, %v156_v31, %v159_v32 }
  0x48   : > { %v172_v39 = vsel %vm168_vm4, %v156_v31, %v171_v36  ;;  %v175_v40 = vsel %vm169_vm2, %v162_v33, 920167782  ;;  %v179_v41 = vsel %vm169_vm2, %v165_v34, 1326507024  ;;  %v242_v22 = vlaneseq }
  0x49   : > { %v176_v42 = vsel %vm168_vm4, %v159_v32, %v175_v40  ;;  %v180_v43 = vsel %vm168_vm4, %v162_v33, %v179_v41  ;;  %v173_v44 = vsel %vm167_vm3, %v170_v35, %v172_v39  ;;  %v241_v24 = vunpack.c.0.s8 %v240_v21 }
  0x4a   : > { %v177_v45 = vsel %vm167_vm3, %v174_v37, %v176_v42  ;;  %v181_v46 = vsel %vm167_vm3, %v178_v38, %v180_v43  ;;  %v189_v51 = vmul.u32 %v182_v29, %v173_v44  ;;  %v243_v25 = vshrl.u32 %v242_v22, 7 }
  0x4b   : > { %v719_v47 = vmul.u32.u64.low %v182_v29, %v181_v46  ;;  %v720_v48 = vmul.u32.u64.high %v182_v29, %v181_v46, %v719_v47  ;;  %v722_v49 = vmul.u32.u64.low %v182_v29, %v177_v45  ;;  %v723_v50 = vmul.u32.u64.high %v182_v29, %v177_v45, %v722_v49 }
  0x4c   : > { %v244_v30 = vsub.s32 %v241_v24, %v243_v25 }
  0x4d   : > { %vm191_vm5 = vc.u32 %v720_v48, %v722_v49  ;;  %v192_v52 = vadd.s32 1, %v723_v50  ;;  %v190_v63 = vadd.s32 %v722_v49, %v720_v48 }
  0x4f   : > { %v193_v53 = vsel %vm191_vm5, %v192_v52, %v723_v50 }
  0x50   : > { %v194_v54 = vadd.s32 %v193_v53, %v189_v51 }
  0x52   : > { %v195_v55 = vadd.s32 536870912, %v194_v54 }
  0x54   : > { %v196_v56 = vshrl.u32 %v195_v55, 30 }
  0x56   : > { %v197_v57 = vshll.u32 %v196_v56, 30  ;;  %v220_v16 = vsub.s32 4, %v196_v56 }
  0x58   : > { %v198_v58 = vsub.s32 %v194_v54, %v197_v57  ;;  %v221_v18 = vsel %vm136_vm7, %v220_v16, %v196_v56 }
  0x59   : > { %v223_v19 = vsel %vm135_vm8, 0, %v221_v18 }
  0x5a   : > { %v200_v59 = vsub.s32 0, %v198_v58  ;;  %v227_v23 = vand.u32 3, %v223_v19 }
  0x5c   : > { %v411_v60 = vmin.u32 %v200_v59, %v198_v58  ;;  %vm232_vm9 = vcmp.eq.s32.totalorder %v227_v23, 2  ;;  %vm229_vm10 = vcmp.eq.s32.totalorder %v227_v23, 0  ;;  %vm228_vm11 = vcmp.lt.s32.totalorder %v227_v23, 2 }
  0x5e   : > { %v202_v61 = vclz %v411_v60 }
  0x60   : > { %v412_v62 = vadd.s32 4294967294, %v202_v61 }
  0x62   : > { %vm413_vm6 = vcmp.lt.s32.totalorder %v412_v62, 0 }
  0x63   : > { %v205_v1 = vsel %vm413_vm6, 0, %v412_v62 }
  0x64   : > { %v206_v2 = vsub.s32 32, %v205_v1  ;;  %v207_v4 = vshll.u32 %v198_v58, %v205_v1  ;;  %v210_v5 = vsub.s32 4294967266, %v205_v1 }
  0x66   : > { %v208_v6 = vshrl.u32 %v190_v63, %v206_v2  ;;  %v211_v7 = vadd.s32 127, %v210_v5 }
  0x68   : > { %v209_v8 = vor.u32 %v208_v6, %v207_v4  ;;  %v212_v9 = vshll.u32 %v211_v7, 23 }
  0x6a   : > { %v213_v10 = vor.u32 4788187, %v212_v9  ;;  %v216_v11 = vcvt.s32.f32 %v209_v8 }
  0x6c   : > { %v214_v12 = vand.u32 2147483647, %v213_v10 }
  0x6e   : > { %v217_v13 = vmul.f32 %v216_v11, %v214_v12 }
  0x70   : > { %v218_v14 = vxor.u32 2147483648, %v217_v13 }
  0x72   : > { %v219_v15 = vsel %vm136_vm7, %v218_v14, %v217_v13 }
  0x73   : > { %v222_v17 = vsel %vm135_vm8, %v713_v0, %v219_v15  ;;  %v254_v0 = vand.u32 127, %v242_v22 }
  0x74   : > { %486 = vcosq.f32 %v222_v17 }
  0x75   : > { %488 = vsinq.f32 %v222_v17  ;;  %vm276_vm13 = vcmp.lt.s32.totalorder %v254_v0, 112  ;;  %vm255_vm14 = vcmp.lt.s32.totalorder %v254_v0, 127  ;;  %vm297_vm15 = vcmp.lt.s32.totalorder %v254_v0, 111 }
  0x81   : > { %v487_v26 = vpop.eup %486 }
  0x82   : > { %v489_v27 = vpop.eup %488  ;;  %v233_v3 = vxor.u32 2147483648, %v487_v26 }
  0x83   : > { %v230_v28 = vxor.u32 2147483648, %v489_v27 }
  0x84   : > { %v234_v29 = vsel %vm232_vm9, %v233_v3, %v489_v27 }
  0x85   : > { %v231_v31 = vsel %vm229_vm10, %v487_v26, %v230_v28 }
  0x86   : > { %v235_v32 = vsel %vm228_vm11, %v231_v31, %v234_v29 }
  0x87   : > { %v236_v33 = vsel %vm226_vm12, nan, %v235_v32 }
  0x88   : > { %237 = vst [vmem:[%s735_s25] sm:$0xf] %v236_v33  ;;  %v245_v34 = vrot.slane %v236_v33, %v244_v30 }
  0x8a   : > { %272 = vrot.lane.b32.xlu1 %v245_v34, %s592_s26  ;;  %249 = vrot.lane.b32.xlu0 %v245_v34, %s593_s27  ;;  %v246_v35 = vcombine.high %v245_v34, %v245_v34 }
  0x8e   : > { %274 = vrot.lane.b32.xlu1 %v246_v35, %s592_s26  ;;  %251 = vrot.lane.b32.xlu0 %v246_v35, %s593_s27 }
  0x92   : > { %295 = vrot.lane.b32.xlu1 %v246_v35, %s594_s28  ;;  %293 = vrot.lane.b32.xlu0 %v245_v34, %s594_s28 }
  0xfc   : > { %v273_v36 = vpop.permute.xlu1 %272  ;;  %v250_v37 = vpop.permute.xlu0 %249 }
 0x100   : > { %v275_v38 = vpop.permute.xlu1 %274  ;;  %v252_v39 = vpop.permute.xlu0 %251 }
 0x101   : > { %v277_v40 = vsel %vm276_vm13, %v273_v36, %v275_v38  ;;  %v278_v41 = vsel %vm276_vm13, %v275_v38, %v273_v36  ;;  %v256_v42 = vsel %vm255_vm14, %v250_v37, %v252_v39  ;;  %v257_v43 = vsel %vm255_vm14, %v252_v39, %v250_v37 }
 0x102   : > { %v281_v44 = vcombine.low %v277_v40, %v278_v41  ;;  %v260_v45 = vcombine.low %v256_v42, %v257_v43 }
 0x104   : > { %v267_v46 = vrot.slane %v260_v45, %v244_v30  ;;  %v296_v47 = vpop.permute.xlu1 %295  ;;  %v294_v48 = vpop.permute.xlu0 %293  ;;  %v288_v51 = vrot.slane %v281_v44, %v244_v30 }
 0x105   : > { %v298_v49 = vsel %vm297_vm15, %v294_v48, %v296_v47  ;;  %v299_v50 = vsel %vm297_vm15, %v296_v47, %v294_v48 }
 0x106   : > { %v269_v52 = vmul.f32 %v267_v46, %v236_v33  ;;  %v302_v53 = vcombine.low %v298_v49, %v299_v50 }
 0x108   : > { %414 = vst [vmem:[%s735_s25 + $0x4] sm:$0xf] %v269_v52  ;;  %v290_v54 = vmul.f32 %v288_v51, %v269_v52  ;;  %v309_v55 = vrot.slane %v302_v53, %v244_v30 }
 0x10a   : > { %415 = vst [vmem:[%s735_s25 + $0x8] sm:$0xf] %v290_v54  ;;  %v311_v56 = vmul.f32 %v309_v55, %v290_v54 }
 0x10c   : > { %416 = vst [vmem:[%s735_s25 + $0xc] sm:$0xf] %v311_v56 }
 0x10d   : > { %531 = shalt.err (!%p528_p9)
}
 0x10e   : > { %s532_s16 = scalar_lea.hbm %s746_s4, 256  ;;  %s536_s23 = scalar_lea.hbm %s791_s1, 1024 }
 0x10f   : > { %p533_p1 = scmp.ne.s32.totalorder %s746_s4, %s532_s16  ;;  %p537_p5 = scmp.lt.s32.totalorder %s746_s4, %s791_s1 }
 0x110   : > { %p538_p13 = scmp.lt.s32.totalorder %s536_s23, %s532_s16 }
 0x111   : > { %p534_p3 = pnand %p533_p1, %p802_p11 }
 0x112   : > { %p539_p6 = por %p538_p13, %p537_p5 }
 0x113   : > { %p535_p4 = pneg %p534_p3 }
 0x115   : > { %p540_p10 = pnand %p539_p6, %p535_p4 }
 0x117   : > { %543 = shalt.err (!%p540_p10)
}
 0x118   : > { %s596_s25 = smov 64   ;;  %s597_s26 = smov 4  }
 0x119   : > { %430 = dma.vmem_to_hbm [thread:$0]  (%p802_p11), %s740_s29, 256, %s746_s4, %s315_s5, %s596_s25, %s596_s25, %s597_s26  }
 0x11a PF: > { %p441_p12 = scmp.ge.s32.totalorder %s582_s9, 2  ;;  %s343_s27 = sand.u32 1, %s570_s6  }
 0x11b   : > { %p803_p0 = scmp.ne.s32.totalorder %s797_s19, 0  ;;  %s344_s28 = scalar_lea.sflag [#allocation4], %s343_s27 }
 0x11d   : > { %p437_p2 = pnand %p441_p12, %p803_p0 }
 0x11f   : > { %p438_p7 = pneg %p437_p2 }
 0x121   : > { %565 = dma.done.wait (%p438_p7), %s344_s28, 256  }
 0x122   : > { %567 = vsyncadd (%p438_p7), %s344_s28, 4294967040  ;;  %p14_p8 = scmp.ge.s32.totalorder %s633_s12, 6   ;;  %s804_s6 = smov %s574_s7 }
 0x123   : > { %s805_s7 = smov %s578_s8  ;;  %s806_s8 = smov %s645_s15 }
 0x124   : > { %s807_s9 = smov %s633_s12  ;;  %16 = sbr.rel (!%p14_p8) target bundleno = 5 (0x5), region = 72 }
 0x129   :  { %349 = vsyncpa [#allocation3], 1 }
 0x12a   :  { %351 = vsyncpa [#allocation3 + $0x1], 1 }
 0x12b   :  { %352 = vsyncpa [#allocation4], 1 }
 0x12c   :  { %354 = vsyncpa [#allocation4 + $0x1], 1 }

</bundles_post_ra>
